<compile_context>
chip_gen: v6e
topology: v6e:2x2x1
jax: 0.10.0
libtpu: 0.0.40
codegen_flags: <defaults>
</compile_context>

<pallas_src>
import functools

import numpy as np
import jax
import jax.numpy as jnp
from jax import lax
from jax.experimental import pallas as pl
from jax.experimental.pallas import tpu as pltpu


def _ntxent_kernel(z_row_ref, z_col_ref, out_ref, sim_ref, *,
                   bsz, inv_T, tm, tn, n, compute_dtype):
    i = pl.program_id(0)
    j = pl.program_id(1)

    # ---- MXU: sim tile = (z_rows * 1/T) @ z_cols^T, contraction on last dim.
    zr = (z_row_ref[...].astype(jnp.float32) * inv_T).astype(compute_dtype)
    zc = z_col_ref[...].astype(compute_dtype)
    sim_tile = lax.dot_general(
        zr, zc,
        dimension_numbers=(((1,), (1,)), ((), ())),
        preferred_element_type=jnp.float32,
    )  # (tm, tn) float32

    if tn == n:  # single column block: plain full store into the scratch
        sim_ref[...] = sim_tile
    else:
        col0 = pl.multiple_of(j * tn, tn)
        sim_ref[:, pl.ds(col0, tn)] = sim_tile

    # ---- epilogue: full sim row-block resident -> emit logits row-block.
    @pl.when(j == pl.num_programs(1) - 1)
    def _():
        sim_row = sim_ref[...]                                    # (tm, n) f32
        row = i * tm + lax.broadcasted_iota(jnp.int32, (tm, 1), 0)
        partner = jnp.where(row < bsz, row + bsz, row - bsz)      # (tm, 1)
        a = jnp.minimum(row, partner)                             # low removed col
        b = jnp.maximum(row, partner)                             # high removed col
        lane = lax.broadcasted_iota(jnp.int32, (tm, n), 1)

        # positive: sim[r, partner(r)] via masked cross-lane reduction.
        pos = jnp.sum(jnp.where(lane == partner, sim_row, 0.0),
                      axis=1, keepdims=True)                      # (tm, 1)

        # negatives: compact each row past its two removed columns.  Output
        # column c (>=1) takes sim[c-1], sim[c] or sim[c+1] depending on how
        # many removed columns lie at/below c-1.  Shifted copies come from
        # static slices (lane shift on the XLU); the edge-fill values are
        # never used (column 0 is pos, column n-1 is padding).
        sim_cm1 = jnp.concatenate([sim_row[:, :1], sim_row[:, : n - 1]], axis=1)
        sim_cp1 = jnp.concatenate([sim_row[:, 1:], sim_row[:, n - 1:]], axis=1)
        m = lane - 1
        neg = jnp.where(m < a, sim_cm1,
                        jnp.where(m < b - 1, sim_row, sim_cp1))
        out_ref[...] = jnp.where(lane == 0, pos, neg)


def _choose_tile(n, target, align):
    """Largest multiple of `align` that divides n and is <= target, else n."""
    if n <= target:
        return n
    t = (target // align) * align
    while t >= align:
        if n % t == 0:
            return t
        t -= align
    return n


def ntxent_forward(z, bsz, T, *, compute_dtype=jnp.bfloat16):
    """NtXent.forward(z) -> (logits, labels).

    z:      (2*bsz, dim) float array
    logits: (2*bsz, 2*bsz - 1) float32  [pos | negatives in increasing column]
    labels: (2*bsz,) int32 zeros  (torch.long -> int32 with x64 disabled)
    """
    N, D = z.shape
    assert N == 2 * bsz, "z must have 2*bsz rows"

    # Row tile: bounded so the (tm, N) f32 scratch + double-buffered (tm, N)
    # output block + epilogue temporaries stay well inside VMEM (v7x: 64 MiB).
    tm_cap = int(min(256, max(8, (1 << 20) // max(N, 1))))
    tm_cap = max(8, (tm_cap // 8) * 8)
    tm = _choose_tile(N, tm_cap, 8)
    # Column tile of z: multiple of 128 (lane / MXU friendly) when possible.
    tn = _choose_tile(N, 512, 128)

    grid = (N // tm, N // tn)
    kernel = functools.partial(
        _ntxent_kernel, bsz=bsz, inv_T=1.0 / float(T),
        tm=tm, tn=tn, n=N, compute_dtype=compute_dtype)

    # VMEM budget: scratch + 2x output block + 2x each input block (+ slack).
    est = 4 * (3 * tm * N + 2 * (tm + tn) * D) + (8 << 20)
    vmem_limit = int(min(112 << 20, max(32 << 20, est)))

    out_padded = pl.pallas_call(
        kernel,
        out_shape=jax.ShapeDtypeStruct((N, N), jnp.float32),
        grid_spec=pltpu.PrefetchScalarGridSpec(
            num_scalar_prefetch=0,
            grid=grid,
            in_specs=[
                pl.BlockSpec((tm, D), lambda i, j: (i, 0)),   # row tile of z
                pl.BlockSpec((tn, D), lambda i, j: (j, 0)),   # col tile of z
            ],
            out_specs=pl.BlockSpec((tm, N), lambda i, j: (i, 0)),
            scratch_shapes=[pltpu.VMEM((tm, N), jnp.float32)],
        ),
        compiler_params=pltpu.CompilerParams(
            dimension_semantics=("parallel", "arbitrary"),
            vmem_limit_bytes=vmem_limit,
        ),
    )(z, z)

    logits = out_padded[:, : N - 1]   # drop the lane-padding column
    labels = jnp.zeros((N,), dtype=jnp.int32)
    return logits, labels


def _reference(z, bsz, T):
    """Vectorized NumPy reference mirroring the PyTorch module."""
    z = np.asarray(z, dtype=np.float32)
    N = 2 * bsz
    sim = (z @ z.T) / T
    idx = np.arange(N)
    partner = (idx + bsz) % N
    pos = sim[idx, partner].reshape(N, 1)        # cat(diag(+bsz), diag(-bsz))
    mask = np.ones((N, N), dtype=bool)
    mask[idx, idx] = False
    mask[idx, partner] = False
    neg = sim[mask].reshape(N, -1)
    logits = np.concatenate([pos, neg], axis=1)
    labels = np.zeros(N, dtype=np.int32)
    return logits, labels


if __name__ == "__main__":
    bsz = 4          # -> N = 8 rows
    dim = 32
    T = 0.5

    key = jax.random.PRNGKey(0)
    z = jax.random.normal(key, (2 * bsz, dim), dtype=jnp.float32)
    # NT-Xent normally consumes L2-normalized embeddings (not required by the
    # module, but standard usage and what makes the bf16 MXU path safe).
    z = z / jnp.linalg.norm(z, axis=-1, keepdims=True)

    ref_logits, ref_labels = _reference(np.asarray(z), bsz, T)

    # Default path: bf16 MXU operands, f32 accumulation (v6e/v7x fast path).
    logits, labels = ntxent_forward(z, bsz, T, compute_dtype=jnp.bfloat16)
    logits = jax.block_until_ready(logits)
    labels = jax.block_until_ready(labels)
    assert logits.shape == (2 * bsz, 2 * bsz - 1)
    assert labels.shape == (2 * bsz,)
    np.testing.assert_allclose(np.asarray(logits), ref_logits, rtol=2e-2, atol=2e-2)
    np.testing.assert_array_equal(np.asarray(labels), ref_labels)

    # Exact f32 fallback path.
    logits_f32, _ = ntxent_forward(z, bsz, T, compute_dtype=jnp.float32)
    logits_f32 = jax.block_until_ready(logits_f32)
    np.testing.assert_allclose(np.asarray(logits_f32), ref_logits, rtol=1e-5, atol=1e-5)

    print("KERNEL_OK")
</pallas_src>

<mosaic_0001>
module attributes {stable_mosaic.version = 11 : i64} {
  func.func @_ntxent_kernel(%arg0: i32, %arg1: i32, %arg2: memref<8x32xf32, #tpu.memory_space<vmem>>, %arg3: memref<8x32xf32, #tpu.memory_space<vmem>>, %arg4: memref<8x8xf32, #tpu.memory_space<vmem>>, %arg5: memref<8x8xf32, #tpu.memory_space<vmem>>) attributes {dimension_semantics = [#tpu.dimension_semantics<parallel>, #tpu.dimension_semantics<arbitrary>], iteration_bounds = array<i64: 1, 1>, scalar_prefetch = 0 : i64, scratch_operands = 1 : i64, tpu.core_type = #tpu.core_type<tc>, window_params = [{transform_indices = @transform_0, window_bounds = array<i64: 8, 32>}, {transform_indices = @transform_1, window_bounds = array<i64: 8, 32>}, {transform_indices = @transform_2, window_bounds = array<i64: 8, 8>}]} {
    %c0 = arith.constant 0 : index
    %c0_0 = arith.constant 0 : index
    %0 = vector.load %arg2[%c0, %c0_0] : memref<8x32xf32, #tpu.memory_space<vmem>>, vector<8x32xf32>
    %cst = arith.constant 2.000000e+00 : f32
    %1 = vector.broadcast %cst : f32 to vector<8x32xf32>
    %2 = arith.mulf %0, %1 : vector<8x32xf32>
    %3 = arith.truncf %2 : vector<8x32xf32> to vector<8x32xbf16>
    %c0_1 = arith.constant 0 : index
    %c0_2 = arith.constant 0 : index
    %4 = vector.load %arg3[%c0_1, %c0_2] : memref<8x32xf32, #tpu.memory_space<vmem>>, vector<8x32xf32>
    %5 = arith.truncf %4 : vector<8x32xf32> to vector<8x32xbf16>
    %cst_3 = arith.constant dense<0.000000e+00> : vector<8x8xf32>
    %6 = tpu.matmul %3, %5, %cst_3 {dimension_numbers = #tpu.dot_dimension_numbers<[1], [1], [0], [0], [0, 0, 1, 0], [], []>} : vector<8x32xbf16>, vector<8x32xbf16>, vector<8x8xf32> -> vector<8x8xf32>
    %c0_4 = arith.constant 0 : index
    %c0_5 = arith.constant 0 : index
    %7 = vector.load %arg5[%c0_4, %c0_5] : memref<8x8xf32, #tpu.memory_space<vmem>>, vector<8x8xf32>
    tpu.vector_store %arg5[%c0_4, %c0_5], %6 {strides = array<i32>} : memref<8x8xf32, #tpu.memory_space<vmem>>, vector<8x8xf32>,
    %c0_i32 = arith.constant 0 : i32
    %8 = arith.cmpi eq, %arg1, %c0_i32 : i32
    %9 = arith.extui %8 : i1 to i32
    %c0_i32_6 = arith.constant 0 : i32
    %10 = arith.cmpi ne, %9, %c0_i32_6 : i32
    scf.if %10 {
      %c0_7 = arith.constant 0 : index
      %c0_8 = arith.constant 0 : index
      %11 = vector.load %arg5[%c0_7, %c0_8] : memref<8x8xf32, #tpu.memory_space<vmem>>, vector<8x8xf32>
      %c8_i32 = arith.constant 8 : i32
      %12 = arith.muli %arg0, %c8_i32 : i32
      %13 = tpu.iota {dimensions = array<i32: 0>} : vector<8x1xi32>
      %14 = vector.broadcast %12 : i32 to vector<8x1xi32>
      %15 = arith.addi %14, %13 : vector<8x1xi32>
      %c4_i32 = arith.constant 4 : i32
      %16 = vector.broadcast %c4_i32 : i32 to vector<8x1xi32>
      %17 = arith.cmpi slt, %15, %16 : vector<8x1xi32>
      %c4_i32_9 = arith.constant 4 : i32
      %18 = vector.broadcast %c4_i32_9 : i32 to vector<8x1xi32>
      %19 = arith.addi %15, %18 : vector<8x1xi32>
      %c4_i32_10 = arith.constant 4 : i32
      %20 = vector.broadcast %c4_i32_10 : i32 to vector<8x1xi32>
      %21 = arith.subi %15, %20 : vector<8x1xi32>
      %22 = arith.select %17, %19, %21 : vector<8x1xi1>, vector<8x1xi32>
      %23 = arith.minsi %15, %22 : vector<8x1xi32>
      %24 = arith.maxsi %15, %22 : vector<8x1xi32>
      %25 = tpu.iota {dimensions = array<i32: 1>} : vector<8x8xi32>
      %26 = vector.broadcast %22 : vector<8x1xi32> to vector<8x8xi32>
      %27 = arith.cmpi eq, %25, %26 : vector<8x8xi32>
      %cst_11 = arith.constant 0.000000e+00 : f32
      %28 = vector.broadcast %cst_11 : f32 to vector<8x8xf32>
      %29 = arith.select %27, %11, %28 : vector<8x8xi1>, vector<8x8xf32>
      %cst_12 = arith.constant dense<0.000000e+00> : vector<8xf32>
      %30 = vector.multi_reduction <add>, %29, %cst_12 [1] : vector<8x8xf32> to vector<8xf32>
      %31 = vector.shape_cast %30 : vector<8xf32> to vector<8x1xf32>
      %32 = vector.extract_strided_slice %11 {offsets = [0, 0], sizes = [8, 1], strides = [1, 1]} : vector<8x8xf32> to vector<8x1xf32>
      %33 = vector.extract_strided_slice %11 {offsets = [0, 0], sizes = [8, 7], strides = [1, 1]} : vector<8x8xf32> to vector<8x7xf32>
      %34 = tpu.concatenate %32, %33 in 1 : vector<8x1xf32>, vector<8x7xf32> -> vector<8x8xf32>
      %35 = vector.extract_strided_slice %11 {offsets = [0, 1], sizes = [8, 7], strides = [1, 1]} : vector<8x8xf32> to vector<8x7xf32>
      %36 = vector.extract_strided_slice %11 {offsets = [0, 7], sizes = [8, 1], strides = [1, 1]} : vector<8x8xf32> to vector<8x1xf32>
      %37 = tpu.concatenate %35, %36 in 1 : vector<8x7xf32>, vector<8x1xf32> -> vector<8x8xf32>
      %c1_i32 = arith.constant 1 : i32
      %38 = vector.broadcast %c1_i32 : i32 to vector<8x8xi32>
      %39 = arith.subi %25, %38 : vector<8x8xi32>
      %40 = vector.broadcast %23 : vector<8x1xi32> to vector<8x8xi32>
      %41 = arith.cmpi slt, %39, %40 : vector<8x8xi32>
      %c1_i32_13 = arith.constant 1 : i32
      %42 = vector.broadcast %c1_i32_13 : i32 to vector<8x1xi32>
      %43 = arith.subi %24, %42 : vector<8x1xi32>
      %44 = vector.broadcast %43 : vector<8x1xi32> to vector<8x8xi32>
      %45 = arith.cmpi slt, %39, %44 : vector<8x8xi32>
      %46 = arith.select %45, %11, %37 : vector<8x8xi1>, vector<8x8xf32>
      %47 = arith.select %41, %34, %46 : vector<8x8xi1>, vector<8x8xf32>
      %c0_i32_14 = arith.constant 0 : i32
      %48 = vector.broadcast %c0_i32_14 : i32 to vector<8x8xi32>
      %49 = arith.cmpi eq, %25, %48 : vector<8x8xi32>
      %50 = vector.shape_cast %31 : vector<8x1xf32> to vector<8x1xf32>
      %51 = vector.broadcast %50 : vector<8x1xf32> to vector<8x8xf32>
      %52 = arith.select %49, %51, %47 : vector<8x8xi1>, vector<8x8xf32>
      %c0_15 = arith.constant 0 : index
      %c0_16 = arith.constant 0 : index
      %53 = vector.load %arg4[%c0_15, %c0_16] : memref<8x8xf32, #tpu.memory_space<vmem>>, vector<8x8xf32>
      tpu.vector_store %arg4[%c0_15, %c0_16], %52 {strides = array<i32>} : memref<8x8xf32, #tpu.memory_space<vmem>>, vector<8x8xf32>,
    } else {
    }
    return
  }
  func.func @transform_0(%arg0: i32, %arg1: i32) -> (i32, i32) {
    %c0_i32 = arith.constant 0 : i32
    %c0_i32_0 = arith.constant 0 : i32
    return %arg0, %c0_i32 : i32, i32
  }
  func.func @transform_1(%arg0: i32, %arg1: i32) -> (i32, i32) {
    %c0_i32 = arith.constant 0 : i32
    %c0_i32_0 = arith.constant 0 : i32
    return %arg1, %c0_i32 : i32, i32
  }
  func.func @transform_2(%arg0: i32, %arg1: i32) -> (i32, i32) {
    %c0_i32 = arith.constant 0 : i32
    %c0_i32_0 = arith.constant 0 : i32
    return %arg0, %c0_i32 : i32, i32
  }
}

</mosaic_0001>

<bundles_post_ra>
// kernel: tpu_custom_call.1
= control target key start
LH: loop header
LB: loop body
LE: loop exit
PB: predicated region body
PF: predicated region fallthrough
CT: control target
= control target key end

     0   :  { %7 = vsyncpa [#allocation4], 0  ;;  %s271_s0 = inlined_call_operand.hbm [shape: f32[8,32], index: 0, kind: input, shape index: {}]   ;;  %s272_s1 = inlined_call_operand.hbm [shape: f32[8,32], index: 1, kind: input, shape index: {}]   ;;  %s273_s2 = inlined_call_operand.hbm [shape: f32[8,8], index: 2, kind: output, shape index: {}]  }
   0x1   :  { %8 = vsyncpa [#allocation7], 0 }
   0x2   :  { %9 = vsyncpa [#allocation5], 0  ;;  %s237_s9 = smov [#allocation3]   ;;  %s238_s11 = smov [#allocation6]  }
   0x3   :  { %s16_s10 = sshll.u32 %s237_s9, 4  ;;  %s26_s12 = sshll.u32 %s238_s11, 4  ;;  %s17_s10 = int_to_ptr.vmem [resolvable:$true] %s16_s10  ;;  %s27_s12 = int_to_ptr.vmem [resolvable:$true] %s26_s12 }
   0x4   :  { %s179_s13 = scalar_lea.vmem %s17_s10, 128  ;;  %p184_p1 = scmp.lt.s32.totalorder %s17_s10, %s17_s10 }
   0x5   :  { %p180_p0 = scmp.ne.s32.totalorder %s17_s10, %s179_s13  ;;  %p185_p2 = scmp.lt.s32.totalorder %s179_s13, %s179_s13 }
   0x7   :  { %p186_p3 = por %p185_p2, %p184_p1 }
   0x9   :  { %p187_p4 = pnand %p186_p3, %p180_p0 }
   0xb   :  { %190 = shalt.err (!%p187_p4)
}
   0xc   :  { %19 = dma.hbm_to_vmem [thread:$0]  %s271_s0, 128, %s17_s10, [#allocation4]  }
   0xd   :  { %s199_s16 = scalar_lea.vmem %s27_s12, 128  ;;  %p204_p6 = scmp.lt.s32.totalorder %s27_s12, %s27_s12 }
   0xe   :  { %p200_p5 = scmp.ne.s32.totalorder %s27_s12, %s199_s16  ;;  %p205_p7 = scmp.lt.s32.totalorder %s199_s16, %s199_s16 }
  0x10   :  { %p206_p8 = por %p205_p7, %p204_p6 }
  0x12   :  { %p207_p9 = pnand %p206_p8, %p200_p5 }
  0x14   :  { %210 = shalt.err (!%p207_p9)
}
  0x15   :  { %29 = dma.hbm_to_vmem [thread:$0]  %s272_s1, 128, %s27_s12, [#allocation7]  }
  0x16   :  { %231 = dma.done.wait [#allocation4], 128  }
  0x17   :  { %232 = vsyncadd [#allocation4], 4294967168 }
  0x18   :  { %233 = dma.done.wait [#allocation7], 128  }
  0x19   :  { %234 = vsyncadd [#allocation7], 4294967168  ;;  %v239_v0 = vmov 0.0   ;;  %vm240_vm0 = vmmov 0   ;;  %v40_v1 = vld [vmem:[#allocation6] sm:$0xff]  ;;  %vm42_vm1 = vcmask 261120   ;;  %v97_v7 = vlaneseq }
  0x1a   :  { %158 = vmatprep.subr.bf16.mxu0 %v239_v0  ;;  %160 = vmatprep.mubr.msk.bf16.mxu0 %vm240_vm0, %v239_v0  ;;  %v37_v2 = vld [vmem:[#allocation3] sm:$0xff]  ;;  %v41_v3 = vpack.c.bf16 %v40_v1, %v40_v1  ;;  %vm89_vm2 = vcmask 64512   ;;  %s241_s0 = smov 1   ;;  %s242_s1 = smov 127   ;;  %vm125_vm7 = vcmask 56320   ;;  %vm120_vm8 = vcmask 7168  }
  0x1b   :  { %v38_v5 = vmul.f32 2.0, %v37_v2  ;;  %v98_v8 = vshrl.u32 %v97_v7, 7  ;;  %v110_v13 = vand.u32 127, %v97_v7  ;;  %s243_s19 = smov [#allocation8]  }
  0x1c   :  { %v47_v4 = vsel %vm42_vm1, %v41_v3, 0  ;;  %s142_s20 = sshll.u32 %s243_s19, 4  ;;  %s143_s20 = int_to_ptr.vmem [resolvable:$true] %s142_s20 }
  0x1d   :  { %159 = vmatpush3.bf16.xpose.msra.mxu0 %v47_v4  ;;  %v39_v6 = vpack.c.bf16 %v38_v5, %v38_v5  ;;  %v102_v9 = vadd.s32 4, %v98_v8  ;;  %v153_v10 = vadd.s32 4294967292, %v98_v8  ;;  %vm101_vm3 = vcmp.lt.s32.totalorder %v98_v8, 4  ;;  %s211_s21 = scalar_lea.vmem %s143_s20, 128  ;;  %p216_p11 = scmp.lt.s32.totalorder %s143_s20, %s143_s20 }
  0x1e   :  { %v154_v21 = vadd.s32 4294967295, %v110_v13  ;;  %vm133_vm11 = vcmp.eq.s32.totalorder %v110_v13, 0  ;;  %p212_p10 = scmp.ne.s32.totalorder %s143_s20, %s211_s21  ;;  %p217_p12 = scmp.lt.s32.totalorder %s211_s21, %s211_s21 }
  0x1f   :  { %v104_v14 = vsel %vm101_vm3, %v102_v9, %v153_v10 }
  0x20   :  { %vm111_vm4 = vcmp.eq.s32.totalorder %v110_v13, %v104_v14  ;;  %vm107_vm5 = vcmp.gt.s32.totalorder %v98_v8, %v104_v14  ;;  %vm105_vm6 = vcmp.lt.s32.totalorder %v98_v8, %v104_v14  ;;  %p218_p13 = por %p217_p12, %p216_p11 }
  0x21   :  { %v108_v20 = vsel %vm107_vm5, %v98_v8, %v104_v14  ;;  %v106_v24 = vsel %vm105_vm6, %v98_v8, %v104_v14 }
  0x22   :  { %v155_v22 = vadd.s32 4294967295, %v108_v20  ;;  %vm128_vm10 = vcmp.lt.s32.totalorder %v154_v21, %v106_v24  ;;  %p219_p0 = pnand %p218_p13, %p212_p10 }
  0x24   :  { %161 = vmatmul.mubr.msk.bf16.vlgmr.msra.gmra.mxu0 %vm42_vm1, %v39_v6  ;;  %vm130_vm9 = vcmp.lt.s32.totalorder %v154_v21, %v155_v22 }
  0xe4   :  { %v83_v11 = vpop.f32.mrf.mxu0 }
  0xe5   :  { %90 = vst.msk [vmem:[#allocation2] sm:$0xff] %vm89_vm2, %v83_v11 }
  0xe6   :  { %v162_v12 = vpop.f32.mrf.mxu0 }
  0xe8   :  { %v86_v15 = vpop.f32.mrf.mxu0 }
  0xea   :  { %v163_v16 = vpop.f32.mrf.mxu0 }
  0xec   :  { %v95_v17 = vld [vmem:[#allocation2] sm:$0xff] }
  0xed   :  { %117 = vrot.lane.b32.xlu1 %v95_v17, %s241_s0  ;;  %v112_v18 = vsel %vm111_vm4, %v95_v17, 0.0 }
  0xee   :  { %v113_v19 = vsel %vm89_vm2, %v112_v18, 0.0 }
  0xef   :  { %114 = vadd.xlane.f32.xlu0 %v113_v19 }
 0x105   :  { %122 = vrot.lane.b32.xlu0 %v95_v17, %s242_s1 }
 0x15f   :  { %v118_v25 = vpop.permute.xlu1 %117 }
 0x160   :  { %v121_v28 = vsel %vm120_vm8, %v95_v17, %v118_v25 }
 0x178   :  { %v115_v23 = vpop.xlane.xlu0 %114 }
 0x17c   :  { %v123_v26 = vpop.permute.xlu0 %122 }
 0x17d   :  { %v126_v27 = vsel %vm125_vm7, %v123_v26, %v95_v17 }
 0x17e   :  { %v131_v29 = vsel %vm130_vm9, %v95_v17, %v126_v27 }
 0x17f   :  { %v132_v30 = vsel %vm128_vm10, %v121_v28, %v131_v29 }
 0x180   :  { %v134_v31 = vsel %vm133_vm11, %v115_v23, %v132_v30 }
 0x181   :  { %135 = vst.msk [vmem:[#allocation8] sm:$0xff] %vm89_vm2, %v134_v31 }
 0x182   :  { %222 = shalt.err (!%p219_p0)
}
 0x183   :  { %145 = dma.vmem_to_hbm [thread:$0]  %s143_s20, 128, %s273_s2, [#allocation5]  }
 0x184   :  { %235 = dma.done.wait [#allocation5], 128  }
 0x185   :  { %236 = vsyncadd [#allocation5], 4294967168 }
 0x186   :  { %149 = vsyncpa [#allocation4], 1 }
 0x187   :  { %150 = vsyncpa [#allocation7], 1 }
 0x188   :  { %151 = vsyncpa [#allocation5], 1 }

</bundles_post_ra>
